<compile_context>
chip_gen: v7x
topology: tpu7x:2x2x1
jax: 0.10.0
libtpu: 0.0.40
codegen_flags: <defaults>
</compile_context>

<pallas_src>
import functools

import jax
import jax.numpy as jnp
from jax.experimental import pallas as pl
from jax.experimental.pallas import tpu as pltpu

_LANE = 128      # lane width  (last dim)
_SUBLANE = 8     # sublane width (second-to-last dim, f32)


def _round_up(n, m):
    return ((n + m - 1) // m) * m


def _pad2d(a, rows, cols):
    r, c = a.shape
    return jnp.pad(a, ((0, rows - r), (0, cols - c)))


# ----------------------------------------------------------------------------
# Fused MLP kernel (static Python loop over layers inside one body)
# ----------------------------------------------------------------------------
def _make_mlp_kernel(num_layers):
    def kernel(*refs):
        # refs = (x, w0, b0, ..., w{L-1}, b{L-1}, scale, low, out)
        x_ref = refs[0]
        scale_ref = refs[1 + 2 * num_layers]
        low_ref = refs[2 + 2 * num_layers]
        o_ref = refs[3 + 2 * num_layers]

        a = x_ref[...]
        for l in range(num_layers):
            w_ref = refs[1 + 2 * l]
            b_ref = refs[2 + 2 * l]
            y = jnp.dot(a, w_ref[...], preferred_element_type=jnp.float32)
            y = y + b_ref[...]                     # (1, Out) broadcasts over batch
            if l < num_layers - 1:
                a = jnp.maximum(y, 0.0)            # ReLU hidden layers
            else:
                # (highest - lowest) * sigmoid(y) + lowest, with scale precomputed
                a = scale_ref[...] * jax.nn.sigmoid(y) + low_ref[...]
        o_ref[...] = a.astype(o_ref.dtype)

    return kernel


def _fused_mlp_call(x_p, padded_params, scale_p, low_p):
    """One pallas_call over the whole (padded, lane-dense) network."""
    Bp, _ = x_p.shape
    L = len(padded_params)
    out_p_dim = padded_params[-1][0].shape[1]

    inputs = [x_p]
    for w_p, b_p in padded_params:
        inputs.append(w_p)
        inputs.append(b_p)
    inputs.append(scale_p)
    inputs.append(low_p)

    # Everything fits trivially in VMEM (< 1 MiB): single full-array block.
    in_specs = [pl.BlockSpec(a.shape, lambda i: (0, 0)) for a in inputs]
    out_spec = pl.BlockSpec((Bp, out_p_dim), lambda i: (0, 0))

    return pl.pallas_call(
        _make_mlp_kernel(L),
        out_shape=jax.ShapeDtypeStruct((Bp, out_p_dim), jnp.float32),
        grid=(1,),
        in_specs=in_specs,
        out_specs=out_spec,
        compiler_params=pltpu.CompilerParams(
            dimension_semantics=("arbitrary",)),
    )(*inputs)


# ----------------------------------------------------------------------------
# Wrappers
# ----------------------------------------------------------------------------
def prepare_padded_params(params, lowest, highest):
    """One-time zero-padding of weights/bias/scale/low to lane-dense shapes."""
    dims = [params[0][0].shape[0]] + [w.shape[1] for w, _ in params]
    dims_p = [_round_up(d, _LANE) for d in dims]
    padded = []
    for l, (w, b) in enumerate(params):
        padded.append((_pad2d(w, dims_p[l], dims_p[l + 1]),
                       _pad2d(b, 1, dims_p[l + 1])))
    scale_p = _pad2d(highest - lowest, 1, dims_p[-1])
    low_p = _pad2d(lowest, 1, dims_p[-1])
    return tuple(padded), scale_p, low_p


@functools.partial(jax.jit, static_argnames=("out_dim",))
def forward(x, padded_params, scale_p, low_p, *, out_dim):
    B, _ = x.shape
    Bp = _round_up(B, _SUBLANE)
    in_p = padded_params[0][0].shape[0]
    x_p = _pad2d(x, Bp, in_p)
    out_p = _fused_mlp_call(x_p, padded_params, scale_p, low_p)
    return out_p[:B, :out_dim]


def init_params(key, v_layers):
    """Deterministic nn.Linear-style init: U(-1/sqrt(fan_in), 1/sqrt(fan_in))."""
    params = []
    for in_size, out_size in zip(v_layers, v_layers[1:]):
        key, kw, kb = jax.random.split(key, 3)
        bound = 1.0 / jnp.sqrt(in_size)
        # stored as [in, out] (transpose of torch's [out, in])
        w = jax.random.uniform(kw, (in_size, out_size), jnp.float32, -bound, bound)
        b = jax.random.uniform(kb, (1, out_size), jnp.float32, -bound, bound)
        params.append((w, b))
    return params


def forward_ref(activation, params, lowest, highest):
    L = len(params)
    for l, (w, b) in enumerate(params):
        y = activation @ w + b
        if l < L - 1:
            activation = jnp.maximum(y, 0.0)
        else:
            activation = (highest - lowest) * jax.nn.sigmoid(y) + lowest
    return activation


if __name__ == "__main__":
    key = jax.random.PRNGKey(0)

    # Small shapes consistent with the module: an MLP 32 -> 64 -> 48 -> 16
    v_layers = [32, 64, 48, 16]
    batch = 8
    out_dim = v_layers[-1]

    key, k_x, k_p, k_lim = jax.random.split(key, 4)

    # dLimits: [out_dim, 2] with lowest = min, highest = max
    lims = jax.random.uniform(k_lim, (out_dim, 2), jnp.float32, -3.0, 3.0)
    lowest = jnp.min(lims, axis=1).reshape(1, out_dim)
    highest = jnp.max(lims, axis=1).reshape(1, out_dim)

    params = init_params(k_p, v_layers)
    x = jax.random.normal(k_x, (batch, v_layers[0]), jnp.float32)

    padded_params, scale_p, low_p = prepare_padded_params(params, lowest, highest)

    out = forward(x, padded_params, scale_p, low_p, out_dim=out_dim)
    out = jax.block_until_ready(out)

    # sanity check against pure-JAX reference
    ref = forward_ref(x, params, lowest, highest)
    assert out.shape == (batch, out_dim)
    assert jnp.allclose(out, ref, atol=1e-5, rtol=1e-5)

    print("KERNEL_OK")
</pallas_src>

<mosaic_0001>
module attributes {stable_mosaic.version = 11 : i64} {
  func.func @kernel(%arg0: i32, %arg1: memref<8x128xf32, #tpu.memory_space<vmem>>, %arg2: memref<128x128xf32, #tpu.memory_space<vmem>>, %arg3: memref<1x128xf32, #tpu.memory_space<vmem>>, %arg4: memref<128x128xf32, #tpu.memory_space<vmem>>, %arg5: memref<1x128xf32, #tpu.memory_space<vmem>>, %arg6: memref<128x128xf32, #tpu.memory_space<vmem>>, %arg7: memref<1x128xf32, #tpu.memory_space<vmem>>, %arg8: memref<1x128xf32, #tpu.memory_space<vmem>>, %arg9: memref<1x128xf32, #tpu.memory_space<vmem>>, %arg10: memref<8x128xf32, #tpu.memory_space<vmem>>) attributes {dimension_semantics = [#tpu.dimension_semantics<arbitrary>], iteration_bounds = array<i64: 1>, scalar_prefetch = 0 : i64, scratch_operands = 0 : i64, tpu.core_type = #tpu.core_type<tc>, window_params = [{pipeline_mode = #tpu.pipeline_mode<synchronous>, transform_indices = @transform_0, window_bounds = array<i64: 8, 128>}, {pipeline_mode = #tpu.pipeline_mode<synchronous>, transform_indices = @transform_1, window_bounds = array<i64: 128, 128>}, {pipeline_mode = #tpu.pipeline_mode<synchronous>, transform_indices = @transform_2, window_bounds = array<i64: 1, 128>}, {pipeline_mode = #tpu.pipeline_mode<synchronous>, transform_indices = @transform_3, window_bounds = array<i64: 128, 128>}, {pipeline_mode = #tpu.pipeline_mode<synchronous>, transform_indices = @transform_4, window_bounds = array<i64: 1, 128>}, {pipeline_mode = #tpu.pipeline_mode<synchronous>, transform_indices = @transform_5, window_bounds = array<i64: 128, 128>}, {pipeline_mode = #tpu.pipeline_mode<synchronous>, transform_indices = @transform_6, window_bounds = array<i64: 1, 128>}, {pipeline_mode = #tpu.pipeline_mode<synchronous>, transform_indices = @transform_7, window_bounds = array<i64: 1, 128>}, {pipeline_mode = #tpu.pipeline_mode<synchronous>, transform_indices = @transform_8, window_bounds = array<i64: 1, 128>}, {pipeline_mode = #tpu.pipeline_mode<synchronous>, transform_indices = @transform_9, window_bounds = array<i64: 8, 128>}]} {
    %c0 = arith.constant 0 : index
    %c0_0 = arith.constant 0 : index
    %0 = vector.load %arg1[%c0, %c0_0] : memref<8x128xf32, #tpu.memory_space<vmem>>, vector<8x128xf32>
    %c0_1 = arith.constant 0 : index
    %c0_2 = arith.constant 0 : index
    %1 = vector.load %arg2[%c0_1, %c0_2] : memref<128x128xf32, #tpu.memory_space<vmem>>, vector<128x128xf32>
    %cst = arith.constant dense<0.000000e+00> : vector<8x128xf32>
    %2 = tpu.matmul %0, %1, %cst {dimension_numbers = #tpu.dot_dimension_numbers<[1], [0], [0], [1], [0, 0, 1, 1], [], []>} : vector<8x128xf32>, vector<128x128xf32>, vector<8x128xf32> -> vector<8x128xf32>
    %c0_3 = arith.constant 0 : index
    %c0_4 = arith.constant 0 : index
    %3 = vector.load %arg3[%c0_3, %c0_4] : memref<1x128xf32, #tpu.memory_space<vmem>>, vector<1x128xf32>
    %4 = vector.broadcast %3 : vector<1x128xf32> to vector<8x128xf32>
    %5 = arith.addf %2, %4 : vector<8x128xf32>
    %cst_5 = arith.constant 0.000000e+00 : f32
    %6 = vector.broadcast %cst_5 : f32 to vector<8x128xf32>
    %7 = arith.maximumf %5, %6 : vector<8x128xf32>
    %c0_6 = arith.constant 0 : index
    %c0_7 = arith.constant 0 : index
    %8 = vector.load %arg4[%c0_6, %c0_7] : memref<128x128xf32, #tpu.memory_space<vmem>>, vector<128x128xf32>
    %cst_8 = arith.constant dense<0.000000e+00> : vector<8x128xf32>
    %9 = tpu.matmul %7, %8, %cst_8 {dimension_numbers = #tpu.dot_dimension_numbers<[1], [0], [0], [1], [0, 0, 1, 1], [], []>} : vector<8x128xf32>, vector<128x128xf32>, vector<8x128xf32> -> vector<8x128xf32>
    %c0_9 = arith.constant 0 : index
    %c0_10 = arith.constant 0 : index
    %10 = vector.load %arg5[%c0_9, %c0_10] : memref<1x128xf32, #tpu.memory_space<vmem>>, vector<1x128xf32>
    %11 = vector.broadcast %10 : vector<1x128xf32> to vector<8x128xf32>
    %12 = arith.addf %9, %11 : vector<8x128xf32>
    %cst_11 = arith.constant 0.000000e+00 : f32
    %13 = vector.broadcast %cst_11 : f32 to vector<8x128xf32>
    %14 = arith.maximumf %12, %13 : vector<8x128xf32>
    %c0_12 = arith.constant 0 : index
    %c0_13 = arith.constant 0 : index
    %15 = vector.load %arg6[%c0_12, %c0_13] : memref<128x128xf32, #tpu.memory_space<vmem>>, vector<128x128xf32>
    %cst_14 = arith.constant dense<0.000000e+00> : vector<8x128xf32>
    %16 = tpu.matmul %14, %15, %cst_14 {dimension_numbers = #tpu.dot_dimension_numbers<[1], [0], [0], [1], [0, 0, 1, 1], [], []>} : vector<8x128xf32>, vector<128x128xf32>, vector<8x128xf32> -> vector<8x128xf32>
    %c0_15 = arith.constant 0 : index
    %c0_16 = arith.constant 0 : index
    %17 = vector.load %arg7[%c0_15, %c0_16] : memref<1x128xf32, #tpu.memory_space<vmem>>, vector<1x128xf32>
    %18 = vector.broadcast %17 : vector<1x128xf32> to vector<8x128xf32>
    %19 = arith.addf %16, %18 : vector<8x128xf32>
    %c0_17 = arith.constant 0 : index
    %c0_18 = arith.constant 0 : index
    %20 = vector.load %arg8[%c0_17, %c0_18] : memref<1x128xf32, #tpu.memory_space<vmem>>, vector<1x128xf32>
    %21 = arith.negf %19 : vector<8x128xf32>
    %22 = math.exp %21 : vector<8x128xf32>
    %cst_19 = arith.constant 1.000000e+00 : f32
    %23 = vector.broadcast %cst_19 : f32 to vector<8x128xf32>
    %24 = arith.addf %23, %22 : vector<8x128xf32>
    %25 = arith.divf %23, %24 : vector<8x128xf32>
    %26 = vector.broadcast %20 : vector<1x128xf32> to vector<8x128xf32>
    %27 = arith.mulf %26, %25 : vector<8x128xf32>
    %c0_20 = arith.constant 0 : index
    %c0_21 = arith.constant 0 : index
    %28 = vector.load %arg9[%c0_20, %c0_21] : memref<1x128xf32, #tpu.memory_space<vmem>>, vector<1x128xf32>
    %29 = vector.broadcast %28 : vector<1x128xf32> to vector<8x128xf32>
    %30 = arith.addf %27, %29 : vector<8x128xf32>
    %c0_22 = arith.constant 0 : index
    %c0_23 = arith.constant 0 : index
    %31 = vector.load %arg10[%c0_22, %c0_23] : memref<8x128xf32, #tpu.memory_space<vmem>>, vector<8x128xf32>
    tpu.vector_store %arg10[%c0_22, %c0_23], %30 {strides = array<i32>} : memref<8x128xf32, #tpu.memory_space<vmem>>, vector<8x128xf32>,
    return
  }
  func.func @transform_0(%arg0: i32) -> (i32, i32) {
    %c0_i32 = arith.constant 0 : i32
    %c0_i32_0 = arith.constant 0 : i32
    %c0_i32_1 = arith.constant 0 : i32
    return %c0_i32, %c0_i32_0 : i32, i32
  }
  func.func @transform_1(%arg0: i32) -> (i32, i32) {
    %c0_i32 = arith.constant 0 : i32
    %c0_i32_0 = arith.constant 0 : i32
    %c0_i32_1 = arith.constant 0 : i32
    return %c0_i32, %c0_i32_0 : i32, i32
  }
  func.func @transform_2(%arg0: i32) -> (i32, i32) {
    %c0_i32 = arith.constant 0 : i32
    %c0_i32_0 = arith.constant 0 : i32
    %c0_i32_1 = arith.constant 0 : i32
    return %c0_i32, %c0_i32_0 : i32, i32
  }
  func.func @transform_3(%arg0: i32) -> (i32, i32) {
    %c0_i32 = arith.constant 0 : i32
    %c0_i32_0 = arith.constant 0 : i32
    %c0_i32_1 = arith.constant 0 : i32
    return %c0_i32, %c0_i32_0 : i32, i32
  }
  func.func @transform_4(%arg0: i32) -> (i32, i32) {
    %c0_i32 = arith.constant 0 : i32
    %c0_i32_0 = arith.constant 0 : i32
    %c0_i32_1 = arith.constant 0 : i32
    return %c0_i32, %c0_i32_0 : i32, i32
  }
  func.func @transform_5(%arg0: i32) -> (i32, i32) {
    %c0_i32 = arith.constant 0 : i32
    %c0_i32_0 = arith.constant 0 : i32
    %c0_i32_1 = arith.constant 0 : i32
    return %c0_i32, %c0_i32_0 : i32, i32
  }
  func.func @transform_6(%arg0: i32) -> (i32, i32) {
    %c0_i32 = arith.constant 0 : i32
    %c0_i32_0 = arith.constant 0 : i32
    %c0_i32_1 = arith.constant 0 : i32
    return %c0_i32, %c0_i32_0 : i32, i32
  }
  func.func @transform_7(%arg0: i32) -> (i32, i32) {
    %c0_i32 = arith.constant 0 : i32
    %c0_i32_0 = arith.constant 0 : i32
    %c0_i32_1 = arith.constant 0 : i32
    return %c0_i32, %c0_i32_0 : i32, i32
  }
  func.func @transform_8(%arg0: i32) -> (i32, i32) {
    %c0_i32 = arith.constant 0 : i32
    %c0_i32_0 = arith.constant 0 : i32
    %c0_i32_1 = arith.constant 0 : i32
    return %c0_i32, %c0_i32_0 : i32, i32
  }
  func.func @transform_9(%arg0: i32) -> (i32, i32) {
    %c0_i32 = arith.constant 0 : i32
    %c0_i32_0 = arith.constant 0 : i32
    %c0_i32_1 = arith.constant 0 : i32
    return %c0_i32, %c0_i32_0 : i32, i32
  }
}

</mosaic_0001>

<bundles_post_ra>
// kernel: forward.1
= control target key start
LH: loop header
LB: loop body
LE: loop exit
PB: predicated region body
PF: predicated region fallthrough
CT: control target
= control target key end

     0   :  { %14 = vsyncpa [#allocation3], 0  ;;  %s907_s0 = inlined_call_operand.vmem [shape: f32[8,128], index: 0, kind: input, shape index: {}]   ;;  %s908_s1 = inlined_call_operand.hbm [shape: f32[128,128], index: 1, kind: input, shape index: {}]   ;;  %s909_s2 = inlined_call_operand.vmem [shape: f32[1,128], index: 2, kind: input, shape index: {}]   ;;  %s910_s3 = inlined_call_operand.hbm [shape: f32[128,128], index: 3, kind: input, shape index: {}]   ;;  %s911_s4 = inlined_call_operand.vmem [shape: f32[1,128], index: 4, kind: input, shape index: {}]   ;;  %s912_s5 = inlined_call_operand.hbm [shape: f32[128,128], index: 5, kind: input, shape index: {}]   ;;  %s913_s6 = inlined_call_operand.vmem [shape: f32[1,128], index: 6, kind: input, shape index: {}]   ;;  %s914_s7 = inlined_call_operand.vmem [shape: f32[1,128], index: 7, kind: input, shape index: {}]   ;;  %s915_s8 = inlined_call_operand.vmem [shape: f32[1,128], index: 8, kind: input, shape index: {}]   ;;  %s916_s9 = inlined_call_operand.hbm [shape: f32[8,128], index: 9, kind: output, shape index: {}]  }
   0x1   :  { %15 = vsyncpa [#allocation6], 0 }
   0x2   :  { %16 = vsyncpa [#allocation4], 0  ;;  %s736_s30 = smov [#allocation5]   ;;  %s737_s11 = smov [#allocation2]  }
   0x3   :  { %s38_s10 = sshll.u32 %s736_s30, 4  ;;  %s24_s12 = sshll.u32 %s737_s11, 4  ;;  %s39_s10 = int_to_ptr.vmem [resolvable:$true] %s38_s10  ;;  %s795_s12 = int_to_ptr.vmem [resolvable:$true] %s24_s12 }
   0x4   :  { %s642_s15 = scalar_lea.hbm %s910_s3, 2048 }
   0x5   :  { %p643_p0 = scmp.ne.s32.totalorder %s910_s3, %s642_s15  ;;  %p646_p1 = scmp.lt.u32.totalorder %s642_s15, %s910_s3 }
   0x7   :  { %p648_p2 = pnand %p646_p1, %p643_p0 }
   0x9   :  { %651 = shalt.err (!%p648_p2)
}
   0xa   :  { %s652_s20 = scalar_lea.vmem %s39_s10, 2048  ;;  %p657_p4 = scmp.lt.s32.totalorder %s39_s10, %s39_s10 }
   0xb   :  { %p653_p3 = scmp.ne.s32.totalorder %s39_s10, %s652_s20  ;;  %p658_p5 = scmp.lt.s32.totalorder %s652_s20, %s652_s20 }
   0xd   :  { %p659_p6 = por %p658_p5, %p657_p4 }
   0xf   :  { %p660_p7 = pnand %p659_p6, %p653_p3 }
  0x11   :  { %663 = shalt.err (!%p660_p7)
}
  0x12   :  { %s738_s21 = smov 128   ;;  %s739_s22 = smov 8  }
  0x13   :  { %44 = dma.hbm_to_vmem [thread:$0]  %s910_s3, 2048, %s39_s10, [#allocation6], %s738_s21, %s738_s21, %s739_s22  }
  0x14   :  { %s664_s27 = scalar_lea.hbm %s908_s1, 2048 }
  0x15   :  { %p665_p8 = scmp.ne.s32.totalorder %s908_s1, %s664_s27  ;;  %p668_p9 = scmp.lt.u32.totalorder %s664_s27, %s908_s1 }
  0x17   :  { %p670_p10 = pnand %p668_p9, %p665_p8 }
  0x19   :  { %673 = shalt.err (!%p670_p10)
}
  0x1a   :  { %s674_s13 = scalar_lea.vmem %s795_s12, 2048  ;;  %p679_p12 = scmp.lt.s32.totalorder %s795_s12, %s795_s12 }
  0x1b   :  { %p675_p11 = scmp.ne.s32.totalorder %s795_s12, %s674_s13  ;;  %p680_p13 = scmp.lt.s32.totalorder %s674_s13, %s674_s13 }
  0x1d   :  { %p681_p0 = por %p680_p13, %p679_p12 }
  0x1f   :  { %p682_p1 = pnand %p681_p0, %p675_p11 }
  0x21   :  { %685 = shalt.err (!%p682_p1)
}
  0x22   :  { %30 = dma.hbm_to_vmem [thread:$0]  %s908_s1, 2048, %s795_s12, [#allocation3], %s738_s21, %s738_s21, %s739_s22  }
  0x23   :  { %s740_s14 = smov [#allocation7]   ;;  %s686_s18 = scalar_lea.hbm %s912_s5, 2048 }
  0x24   :  { %s52_s15 = sshll.u32 %s740_s14, 4  ;;  %p687_p2 = scmp.ne.s32.totalorder %s912_s5, %s686_s18  ;;  %s53_s15 = int_to_ptr.vmem [resolvable:$true] %s52_s15 }
  0x25   :  { %p690_p3 = scmp.lt.u32.totalorder %s686_s18, %s912_s5 }
  0x27   :  { %p692_p4 = pnand %p690_p3, %p687_p2 }
  0x29   :  { %695 = shalt.err (!%p692_p4)
}
  0x2a   :  { %s696_s25 = scalar_lea.vmem %s53_s15, 2048  ;;  %p701_p6 = scmp.lt.s32.totalorder %s53_s15, %s53_s15 }
  0x2b   :  { %p697_p5 = scmp.ne.s32.totalorder %s53_s15, %s696_s25  ;;  %p702_p7 = scmp.lt.s32.totalorder %s696_s25, %s696_s25 }
  0x2d   :  { %p703_p8 = por %p702_p7, %p701_p6 }
  0x2f   :  { %p704_p9 = pnand %p703_p8, %p697_p5 }
  0x31   :  { %707 = shalt.err (!%p704_p9)
}
  0x32   :  { %58 = dma.hbm_to_vmem [thread:$0]  %s912_s5, 2048, %s53_s15, [#allocation6], %s738_s21, %s738_s21, %s739_s22  }
  0x33   :  { %730 = dma.done.wait [#allocation3], 2048  }
  0x34   :  { %731 = vsyncadd [#allocation3], 4294965248 }
  0x35   :  { %732 = dma.done.wait [#allocation6], 4096  }
  0x36   :  { %733 = vsyncadd [#allocation6], 4294963200  ;;  %v741_v0 = vmov 0.0|0.0   ;;  %vm742_vm0 = vmmov 0   ;;  %v743_v1 = vmov 0.0   ;;  %v75_v2 = vld [vmem:[#allocation2] sm:$0xff] }
  0x37   :  { %557 = vmatprep.subr.bf16.mxu0 %v741_v0  ;;  %484 = vmatprep.mubr.msk.f32.mxu0 %vm742_vm0, %v743_v1  ;;  %v76_v3 = vld [vmem:[#allocation2 + $0x8] sm:$0xff]  ;;  %v77_v4 = vld [vmem:[#allocation2 + $0x10] sm:$0xff]  ;;  %v78_v6 = vld [vmem:[#allocation2 + $0x18] sm:$0xff]  ;;  %s744_s13 = smov [#allocation8]  }
  0x38   :  { %581 = vmatprep.subr.bf16.mxu1 %v741_v0  ;;  %519 = vmatprep.mubr.msk.f32.mxu1 %vm742_vm0, %v743_v1  ;;  %v558_v5 = vpack.c.bf16 %v76_v3, %v75_v2  ;;  %v561_v7 = vpack.c.bf16 %v78_v6, %v77_v4  ;;  %v79_v8 = vld [vmem:[#allocation2 + $0x20] sm:$0xff]  ;;  %v80_v9 = vld [vmem:[#allocation2 + $0x28] sm:$0xff]  ;;  %v171_v12 = vld [vmem:[#allocation5 + $0x10] sm:$0xff]  ;;  %s385_s3 = sshll.u32 %s744_s13, 4  ;;  %s386_s3 = int_to_ptr.vmem [resolvable:$true] %s385_s3 }
  0x39   :  { %v169_v10 = vld [vmem:[#allocation5] sm:$0xff]  ;;  %v170_v11 = vld [vmem:[#allocation5 + $0x8] sm:$0xff]  ;;  %v172_v13 = vld [vmem:[#allocation5 + $0x18] sm:$0xff]  ;;  %v564_v14 = vpack.c.bf16 %v80_v9, %v79_v8  ;;  %p713_p11 = scmp.lt.s32.totalorder %s386_s3, %s386_s3 }
  0x3a   :  { %559 = vmatpush3.bf16.msra.mxu0 %v558_v5  ;;  %v582_v15 = vpack.c.bf16 %v170_v11, %v169_v10  ;;  %v81_v16 = vld [vmem:[#allocation2 + $0x30] sm:$0xff]  ;;  %v82_v17 = vld [vmem:[#allocation2 + $0x38] sm:$0xff]  ;;  %v585_v18 = vpack.c.bf16 %v172_v13, %v171_v12  ;;  %v173_v19 = vld [vmem:[#allocation5 + $0x20] sm:$0xff] }
  0x3b   :  { %560 = vmatprep.subr.bf16.mxu0 %v741_v0  ;;  %v174_v20 = vld [vmem:[#allocation5 + $0x28] sm:$0xff]  ;;  %v567_v21 = vpack.c.bf16 %v82_v17, %v81_v16  ;;  %v83_v22 = vld [vmem:[#allocation2 + $0x40] sm:$0xff]  ;;  %v175_v25 = vld [vmem:[#allocation5 + $0x30] sm:$0xff] }
  0x3c   :  { %583 = vmatpush3.bf16.msra.mxu1 %v582_v15  ;;  %v84_v23 = vld [vmem:[#allocation2 + $0x48] sm:$0xff]  ;;  %v588_v24 = vpack.c.bf16 %v174_v20, %v173_v19  ;;  %v176_v26 = vld [vmem:[#allocation5 + $0x38] sm:$0xff]  ;;  %v85_v28 = vld [vmem:[#allocation2 + $0x50] sm:$0xff] }
  0x3d   :  { %584 = vmatprep.subr.bf16.mxu1 %v741_v0  ;;  %v570_v27 = vpack.c.bf16 %v84_v23, %v83_v22  ;;  %v86_v29 = vld [vmem:[#allocation2 + $0x58] sm:$0xff]  ;;  %v591_v30 = vpack.c.bf16 %v176_v26, %v175_v25  ;;  %v177_v31 = vld [vmem:[#allocation5 + $0x40] sm:$0xff]  ;;  %v178_v32 = vld [vmem:[#allocation5 + $0x48] sm:$0xff] }
  0x3e   :  { %562 = vmatpush3.bf16.msra.mxu0 %v561_v7  ;;  %v573_v33 = vpack.c.bf16 %v86_v29, %v85_v28  ;;  %v87_v34 = vld [vmem:[#allocation2 + $0x60] sm:$0xff]  ;;  %v88_v35 = vld [vmem:[#allocation2 + $0x68] sm:$0xff]  ;;  %v594_v36 = vpack.c.bf16 %v178_v32, %v177_v31  ;;  %v179_v37 = vld [vmem:[#allocation5 + $0x50] sm:$0xff] }
  0x3f   :  { %563 = vmatprep.subr.bf16.mxu0 %v741_v0  ;;  %v180_v38 = vld [vmem:[#allocation5 + $0x58] sm:$0xff]  ;;  %v576_v39 = vpack.c.bf16 %v88_v35, %v87_v34  ;;  %v89_v40 = vld [vmem:[#allocation2 + $0x70] sm:$0xff]  ;;  %v181_v43 = vld [vmem:[#allocation5 + $0x60] sm:$0xff] }
  0x40   :  { %586 = vmatpush3.bf16.msra.mxu1 %v585_v18  ;;  %v90_v41 = vld [vmem:[#allocation2 + $0x78] sm:$0xff]  ;;  %v597_v42 = vpack.c.bf16 %v180_v38, %v179_v37  ;;  %v182_v44 = vld [vmem:[#allocation5 + $0x68] sm:$0xff]  ;;  %v74_v47 = vld [vmem:[%s907_s0] sm:$0xff] }
  0x41   :  { %587 = vmatprep.subr.bf16.mxu1 %v741_v0  ;;  %v579_v45 = vpack.c.bf16 %v90_v41, %v89_v40  ;;  %v600_v46 = vpack.c.bf16 %v182_v44, %v181_v43  ;;  %v183_v48 = vld [vmem:[#allocation5 + $0x70] sm:$0xff]  ;;  %v184_v49 = vld [vmem:[#allocation5 + $0x78] sm:$0xff]  ;;  %v263_v51 = vld [vmem:[#allocation7] sm:$0xff] }
  0x42   :  { %565 = vmatpush3.bf16.msra.mxu0 %v564_v14  ;;  %v603_v50 = vpack.c.bf16 %v184_v49, %v183_v48  ;;  %v264_v52 = vld [vmem:[#allocation7 + $0x8] sm:$0xff]  ;;  %v265_v53 = vld [vmem:[#allocation7 + $0x10] sm:$0xff]  ;;  %v266_v55 = vld [vmem:[#allocation7 + $0x18] sm:$0xff] }
  0x43   :  { %566 = vmatprep.subr.bf16.mxu0 %v741_v0  ;;  %v606_v54 = vpack.c.bf16 %v264_v52, %v263_v51  ;;  %v609_v56 = vpack.c.bf16 %v266_v55, %v265_v53  ;;  %v267_v57 = vld [vmem:[#allocation7 + $0x20] sm:$0xff]  ;;  %v268_v58 = vld [vmem:[#allocation7 + $0x28] sm:$0xff]  ;;  %v269_v60 = vld [vmem:[#allocation7 + $0x30] sm:$0xff] }
  0x44   :  { %589 = vmatpush3.bf16.msra.mxu1 %v588_v24  ;;  %v612_v59 = vpack.c.bf16 %v268_v58, %v267_v57  ;;  %v270_v61 = vld [vmem:[#allocation7 + $0x38] sm:$0xff]  ;;  %v271_v63 = vld [vmem:[#allocation7 + $0x40] sm:$0xff]  ;;  %v273_v3 = vld [vmem:[#allocation7 + $0x50] sm:$0xff] }
  0x45   :  { %590 = vmatprep.subr.bf16.mxu1 %v741_v0  ;;  %v615_v62 = vpack.c.bf16 %v270_v61, %v269_v60  ;;  %v274_v4 = vld [vmem:[#allocation7 + $0x58] sm:$0xff]  ;;  %v275_v6 = vld [vmem:[#allocation7 + $0x60] sm:$0xff]  ;;  %v276_v7 = vld [vmem:[#allocation7 + $0x68] sm:$0xff] }
  0x46   :  { %568 = vmatpush3.bf16.msra.mxu0 %v567_v21  ;;  %v621_v5 = vpack.c.bf16 %v274_v4, %v273_v3  ;;  %v624_v8 = vpack.c.bf16 %v276_v7, %v275_v6  ;;  %v395_v9 = vld [vmem:[%s909_s2] ss:$0 sm:$0xff]  ;;  %v277_v14 = vld [vmem:[#allocation7 + $0x70] sm:$0xff]  ;;  %v278_v15 = vld [vmem:[#allocation7 + $0x78] sm:$0xff] }
  0x47   :  { %569 = vmatprep.subr.bf16.mxu0 %v741_v0  ;;  %v627_v16 = vpack.c.bf16 %v278_v15, %v277_v14  ;;  %v396_v17 = vld [vmem:[%s911_s4] ss:$0 sm:$0xff] }
  0x48   :  { %592 = vmatpush3.bf16.msra.mxu1 %v591_v30  ;;  %v397_v21 = vld [vmem:[%s913_s6] ss:$0 sm:$0xff]  ;;  %s708_s6 = scalar_lea.vmem %s386_s3, 128 }
  0x49   :  { %593 = vmatprep.subr.bf16.mxu1 %v741_v0  ;;  %v399_v28 = vld [vmem:[%s914_s7] ss:$0 sm:$0xff]  ;;  %p709_p10 = scmp.ne.s32.totalorder %s386_s3, %s708_s6  ;;  %p714_p12 = scmp.lt.s32.totalorder %s708_s6, %s708_s6 }
  0x4a   :  { %571 = vmatpush3.bf16.msra.mxu0 %v570_v27  ;;  %v400_v30 = vld [vmem:[%s915_s8] ss:$0 sm:$0xff] }
  0x4b   :  { %572 = vmatprep.subr.bf16.mxu0 %v741_v0  ;;  %p715_p13 = por %p714_p12, %p713_p11 }
  0x4c   :  { %595 = vmatpush3.bf16.msra.mxu1 %v594_v36 }
  0x4d   :  { %596 = vmatprep.subr.bf16.mxu1 %v741_v0  ;;  %p716_p0 = pnand %p715_p13, %p709_p10 }
  0x4e   :  { %574 = vmatpush3.bf16.msra.mxu0 %v573_v33 }
  0x4f   :  { %575 = vmatprep.subr.bf16.mxu0 %v741_v0 }
  0x50   :  { %598 = vmatpush3.bf16.msra.mxu1 %v597_v42 }
  0x51   :  { %599 = vmatprep.subr.bf16.mxu1 %v741_v0 }
  0x52   :  { %577 = vmatpush3.bf16.msra.mxu0 %v576_v39 }
  0x53   :  { %578 = vmatprep.subr.bf16.mxu0 %v741_v0 }
  0x54   :  { %601 = vmatpush3.bf16.msra.mxu1 %v600_v46 }
  0x55   :  { %602 = vmatprep.subr.bf16.mxu1 %v741_v0 }
  0x56   :  { %580 = vmatpush3.bf16.msra.mxu0 %v579_v45 }
  0x57   :  { %605 = vmatprep.subr.bf16.mxu0 %v741_v0 }
  0x58   :  { %604 = vmatpush3.bf16.msra.mxu1 %v603_v50 }
  0x59   :  { %485 = vmatmul.mubr.f32.vlgmr.msra.gmra.mrb[0].mxu0 %v74_v47 }
  0x5a   :  { %554 = vmatprep.mubr.msk.f32.mxu0 %vm742_vm0, %v743_v1  ;;  %607 = vmatpush3.bf16.msra.mxu0 %v606_v54  ;;  %v272_v1 = vld [vmem:[#allocation7 + $0x48] sm:$0xff] }
  0x5b   :  { %608 = vmatprep.subr.bf16.mxu0 %v741_v0  ;;  %v618_v2 = vpack.c.bf16 %v272_v1, %v271_v63 }
  0x5e   :  { %610 = vmatpush3.bf16.msra.mxu0 %v609_v56 }
  0x5f   :  { %611 = vmatprep.subr.bf16.mxu0 %v741_v0 }
  0x62   :  { %613 = vmatpush3.bf16.msra.mxu0 %v612_v59 }
  0x63   :  { %614 = vmatprep.subr.bf16.mxu0 %v741_v0 }
  0x66   :  { %616 = vmatpush3.bf16.msra.mxu0 %v615_v62 }
  0x67   :  { %617 = vmatprep.subr.bf16.mxu0 %v741_v0 }
  0x6a   :  { %619 = vmatpush3.bf16.msra.mxu0 %v618_v2 }
  0x6b   :  { %620 = vmatprep.subr.bf16.mxu0 %v741_v0 }
  0x6e   :  { %622 = vmatpush3.bf16.msra.mxu0 %v621_v5 }
  0x6f   :  { %623 = vmatprep.subr.bf16.mxu0 %v741_v0 }
  0x72   :  { %625 = vmatpush3.bf16.msra.mxu0 %v624_v8 }
  0x73   :  { %626 = vmatprep.subr.bf16.mxu0 %v741_v0 }
  0x76   :  { %628 = vmatpush3.bf16.msra.mxu0 %v627_v16 }
 0x12c   :  { %v164_v10 = vpop.f32.mrb[0].mxu0 }
 0x12d   :  { %v165_v11 = vadd.f32 %v395_v9, %v164_v10  ;;  %v486_v12 = vpop.f32.mrb[1].mxu0 }
 0x12f   :  { %v168_v13 = vmax.f32 %v165_v11, 0.0 }
 0x131   :  { %520 = vmatmul.mubr.f32.vlgmr.msra.gmra.mrb[0].mxu1 %v168_v13 }
 0x204   :  { %v258_v18 = vpop.f32.mrb[0].mxu1 }
 0x205   :  { %v259_v19 = vadd.f32 %v396_v17, %v258_v18  ;;  %v521_v0 = vpop.f32.mrb[1].mxu1 }
 0x207   :  { %v262_v20 = vmax.f32 %v259_v19, 0.0 }
 0x209   :  { %555 = vmatmul.mubr.f32.vlgmr.msra.gmra.mrb[2].mxu0 %v262_v20 }
 0x2dc   :  { %v352_v22 = vpop.f32.mrb[2].mxu0 }
 0x2dd   :  { %v353_v23 = vadd.f32 %v397_v21, %v352_v22  ;;  %v556_v24 = vpop.f32.mrb[3].mxu0 }
 0x2df   :  { %v398_v25 = vmul.f32 -1.442695, %v353_v23 }
 0x2e1   :  { %638 = vpow2.f32 %v398_v25 }
 0x2eb   :  { %v639_v26 = vpop.eup %638 }
 0x2ec   :  { %v360_v27 = vadd.f32 1.0, %v639_v26 }
 0x2ee   :  { %640 = vrcp.f32 %v360_v27 }
 0x2f8   :  { %v641_v29 = vpop.eup %640 }
 0x2f9   :  { %v369_v31 = vmul.f32 %v641_v29, %v399_v28 }
 0x2fb   :  { %v377_v32 = vadd.f32 %v400_v30, %v369_v31 }
 0x2fd   :  { %378 = vst [vmem:[#allocation8] sm:$0xff] %v377_v32 }
 0x2fe   :  { %719 = shalt.err (!%p716_p0)
}
 0x2ff   :  { %s720_s14 = scalar_lea.hbm %s916_s9, 128 }
 0x300   :  { %p721_p1 = scmp.ne.s32.totalorder %s916_s9, %s720_s14  ;;  %p724_p2 = scmp.lt.u32.totalorder %s720_s14, %s916_s9 }
 0x302   :  { %p726_p3 = pnand %p724_p2, %p721_p1 }
 0x304   :  { %729 = shalt.err (!%p726_p3)
}
 0x305   :  { %388 = dma.vmem_to_hbm [thread:$0]  %s386_s3, 128, %s916_s9, [#allocation4]  }
 0x306   :  { %734 = dma.done.wait [#allocation4], 128  }
 0x307   :  { %735 = vsyncadd [#allocation4], 4294967168 }
 0x308   :  { %392 = vsyncpa [#allocation3], 1 }
 0x309   :  { %393 = vsyncpa [#allocation6], 1 }
 0x30a   :  { %394 = vsyncpa [#allocation4], 1 }

</bundles_post_ra>
